<compile_context>
chip_gen: v7x
topology: tpu7x:2x2x1
jax: 0.10.0
libtpu: 0.0.40
codegen_flags: <defaults>
</compile_context>

<pallas_src>
import math

import jax
import jax.numpy as jnp
from jax.experimental import pallas as pl
from jax.experimental.pallas import tpu as pltpu


def _pe_add_kernel(x_ref, pe_ref, o_ref):
    # x_ref/o_ref: (Bblk, TL, D); pe_ref: (1, TL, D) broadcast over the batch dim.
    # Pure HBM-streaming elementwise add; add in the promoted dtype, cast at the store.
    o_ref[...] = (x_ref[...] + pe_ref[...]).astype(o_ref.dtype)


def make_pe_table(max_len: int, d_model: int, dtype=jnp.float32) -> jnp.ndarray:
    """Deterministic sinusoidal table, identical to the PyTorch __init__."""
    position = jnp.arange(max_len, dtype=jnp.float32)[:, None]                  # (L, 1)
    div_term = jnp.exp(
        jnp.arange(0, d_model, 2, dtype=jnp.float32) * (-math.log(10000.0) / d_model)
    )                                                                           # (ceil(D/2),)
    ang = position * div_term                                                   # (L, ceil(D/2))
    pe = jnp.zeros((1, max_len, d_model), dtype=jnp.float32)
    pe = pe.at[0, :, 0::2].set(jnp.sin(ang))
    pe = pe.at[0, :, 1::2].set(jnp.cos(ang)[:, : d_model // 2])                 # odd-D guard
    return pe.astype(dtype)


_MiB = 1024 * 1024


def _vmem_config():
    """(vmem_limit_bytes, per-block byte budget); generation-gated, safe fallback."""
    try:
        cap = getattr(pltpu.get_tpu_info(), "vmem_capacity_bytes", None)
    except Exception:
        cap = None
    if cap is not None and cap >= 100 * _MiB:
        # v5e / v6e: 128 MiB physical VMEM -> big blocks, raised scoped limit.
        return 64 * _MiB, 8 * _MiB
    if cap is not None:
        # v7x: 64 MiB physical VMEM per TensorCore -> stay well under ~48 MiB.
        return 40 * _MiB, 6 * _MiB
    # Unknown generation -> conservative (fits every chip's default headroom).
    return 32 * _MiB, 4 * _MiB


def _sublane(itemsize: int) -> int:
    # Sublane multiple for packed dtypes: 8 for f32, 16 for bf16, 32 for int8/fp8.
    return max(8, 32 // max(1, itemsize))


def _choose_tile_l(max_rows: int, L: int, sub: int) -> int:
    """Sequence tile (rows).  Prefer >= 2 tiles so v7x's two TCs both get work."""
    if max_rows >= L:
        if L >= 2 * sub:
            return min(L, pl.cdiv(pl.cdiv(L, 2), sub) * sub)
        return L                                   # tiny sequence -> single full-extent tile
    return max(sub, (max_rows // sub) * sub)


def positional_encoding(x: jnp.ndarray, pe: jnp.ndarray) -> jnp.ndarray:
    """x: [B, L, D], pe: [1, max_len, D] (max_len >= L) -> x + pe[:, :L]."""
    B, L, D = x.shape
    assert pe.ndim == 3 and pe.shape[0] == 1 and pe.shape[2] == D
    assert pe.shape[1] >= L, "pe table shorter than the sequence"

    vmem_limit, block_budget = _vmem_config()
    itemsize = jnp.dtype(x.dtype).itemsize
    sub = _sublane(itemsize)

    # Fold the batch dim into the block when it fits the block budget (B is small in ViT).
    fold_batch = B * sub * D * itemsize <= block_budget
    rows_budget = block_budget // max(1, (B if fold_batch else 1) * D * itemsize)
    TL = _choose_tile_l(rows_budget, L, sub)
    n_l = pl.cdiv(L, TL)

    # Hot path: pe is used UNSLICED and UNCAST (no per-call HBM copy).  Only the
    # single-full-tile, L % 8 != 0, max_len > L corner needs a (tiny) slice so the
    # pe BlockSpec satisfies the (8,128)/full-extent rule.
    if TL % 8 != 0 and pe.shape[1] != L:
        pe = pe[:, :L]

    if fold_batch:
        grid = (n_l,)
        in_specs = [
            pl.BlockSpec((B, TL, D), lambda l: (0, l, 0)),   # x tile (all batches)
            pl.BlockSpec((1, TL, D), lambda l: (0, l, 0)),   # pe tile (broadcast in-kernel)
        ]
        out_specs = pl.BlockSpec((B, TL, D), lambda l: (0, l, 0))
        dims = ("parallel",)
    else:
        # Fallback for very large B: batch on the minor grid axis so pe's block index
        # is constant across consecutive steps and its DMA is elided.
        grid = (n_l, B)
        in_specs = [
            pl.BlockSpec((1, TL, D), lambda l, b: (b, l, 0)),
            pl.BlockSpec((1, TL, D), lambda l, b: (0, l, 0)),
        ]
        out_specs = pl.BlockSpec((1, TL, D), lambda l, b: (b, l, 0))
        dims = ("parallel", "parallel")

    return pl.pallas_call(
        _pe_add_kernel,
        out_shape=jax.ShapeDtypeStruct((B, L, D), x.dtype),
        grid=grid,
        in_specs=in_specs,
        out_specs=out_specs,
        compiler_params=pltpu.CompilerParams(
            dimension_semantics=dims,
            vmem_limit_bytes=vmem_limit,
        ),
    )(x, pe)


if __name__ == "__main__":
    key = jax.random.PRNGKey(0)
    k1, k2 = jax.random.split(key)

    # --- Test 1: lane-dense primary case (D multiple of 128), f32, multi-tile grid ---
    B, L, D = 2, 64, 128
    x = jax.random.normal(k1, (B, L, D), dtype=jnp.float32)
    pe = make_pe_table(L, D)                              # max_len == L (as in the ViT)
    out = jax.block_until_ready(positional_encoding(x, pe))
    ref = x + pe[:, :L]
    assert out.shape == (B, L, D)
    assert jnp.allclose(out, ref, atol=1e-6), "f32 mismatch vs reference"

    # --- Test 2: the module's actual dims (convDim=20), max_len > seq_len ------------
    B2, L2, D2, MAXLEN2 = 2, 9, 20, 12
    x2 = jax.random.normal(k2, (B2, L2, D2), dtype=jnp.float32)
    pe2 = make_pe_table(MAXLEN2, D2)
    out2 = jax.block_until_ready(positional_encoding(x2, pe2))
    ref2 = x2 + pe2[:, :L2]
    assert jnp.allclose(out2, ref2, atol=1e-6), "ViT-dims mismatch vs reference"

    # --- Test 3: bf16 activations with f32 pe (add in f32, cast only at the store) ----
    xb = x.astype(jnp.bfloat16)
    outb = jax.block_until_ready(positional_encoding(xb, pe))
    refb = (xb.astype(jnp.float32) + pe[:, :L]).astype(jnp.bfloat16)
    assert outb.dtype == jnp.bfloat16
    assert jnp.allclose(outb.astype(jnp.float32), refb.astype(jnp.float32),
                        atol=1e-2), "bf16 mismatch vs reference"

    print("KERNEL_OK")
</pallas_src>

<mosaic_0001>
module attributes {stable_mosaic.version = 11 : i64} {
  func.func @_pe_add_kernel(%arg0: i32, %arg1: memref<2x32x128xf32, #tpu.memory_space<vmem>>, %arg2: memref<1x32x128xf32, #tpu.memory_space<vmem>>, %arg3: memref<2x32x128xf32, #tpu.memory_space<vmem>>) attributes {dimension_semantics = [#tpu.dimension_semantics<parallel>], iteration_bounds = array<i64: 2>, scalar_prefetch = 0 : i64, scratch_operands = 0 : i64, tpu.core_type = #tpu.core_type<tc>, window_params = [{transform_indices = @transform_0, window_bounds = array<i64: 2, 32, 128>}, {transform_indices = @transform_1, window_bounds = array<i64: 1, 32, 128>}, {transform_indices = @transform_2, window_bounds = array<i64: 2, 32, 128>}]} {
    %c0 = arith.constant 0 : index
    %c0_0 = arith.constant 0 : index
    %c0_1 = arith.constant 0 : index
    %0 = vector.load %arg1[%c0, %c0_0, %c0_1] : memref<2x32x128xf32, #tpu.memory_space<vmem>>, vector<2x32x128xf32>
    %c0_2 = arith.constant 0 : index
    %c0_3 = arith.constant 0 : index
    %c0_4 = arith.constant 0 : index
    %1 = vector.load %arg2[%c0_2, %c0_3, %c0_4] : memref<1x32x128xf32, #tpu.memory_space<vmem>>, vector<1x32x128xf32>
    %2 = vector.broadcast %1 : vector<1x32x128xf32> to vector<2x32x128xf32>
    %3 = arith.addf %0, %2 : vector<2x32x128xf32>
    %c0_5 = arith.constant 0 : index
    %c0_6 = arith.constant 0 : index
    %c0_7 = arith.constant 0 : index
    %4 = vector.load %arg3[%c0_5, %c0_6, %c0_7] : memref<2x32x128xf32, #tpu.memory_space<vmem>>, vector<2x32x128xf32>
    tpu.vector_store %arg3[%c0_5, %c0_6, %c0_7], %3 {strides = array<i32>} : memref<2x32x128xf32, #tpu.memory_space<vmem>>, vector<2x32x128xf32>,
    return
  }
  func.func @transform_0(%arg0: i32) -> (i32, i32, i32) {
    %c0_i32 = arith.constant 0 : i32
    %c0_i32_0 = arith.constant 0 : i32
    %c0_i32_1 = arith.constant 0 : i32
    return %c0_i32, %arg0, %c0_i32_0 : i32, i32, i32
  }
  func.func @transform_1(%arg0: i32) -> (i32, i32, i32) {
    %c0_i32 = arith.constant 0 : i32
    %c0_i32_0 = arith.constant 0 : i32
    %c0_i32_1 = arith.constant 0 : i32
    return %c0_i32, %arg0, %c0_i32_0 : i32, i32, i32
  }
  func.func @transform_2(%arg0: i32) -> (i32, i32, i32) {
    %c0_i32 = arith.constant 0 : i32
    %c0_i32_0 = arith.constant 0 : i32
    %c0_i32_1 = arith.constant 0 : i32
    return %c0_i32, %arg0, %c0_i32_0 : i32, i32, i32
  }
}

</mosaic_0001>

<bundles_post_ra>
// kernel: tpu_custom_call.1
= control target key start
LH: loop header
LB: loop body
LE: loop exit
PB: predicated region body
PF: predicated region fallthrough
CT: control target
= control target key end

     0   :  { %7 = vsyncpa [#allocation3], 0  ;;  %s764_s0 = inlined_call_operand.hbm [shape: f32[2,64,128], index: 0, kind: input, shape index: {}]   ;;  %s765_s1 = inlined_call_operand.hbm [shape: f32[1,64,128], index: 1, kind: input, shape index: {}]   ;;  %s766_s2 = inlined_call_operand.hbm [shape: f32[2,64,128], index: 2, kind: output, shape index: {}]  }
   0x1   :  { %9 = vsyncpa [#allocation3 + $0x1], 0 }
   0x2   :  { %10 = vsyncpa [#allocation6], 0 }
   0x3   :  { %12 = vsyncpa [#allocation6 + $0x1], 0 }
   0x4   :  { %13 = vsyncpa [#allocation4], 0 }
   0x5   :  { %15 = vsyncpa [#allocation4 + $0x1], 0  ;;  %s594_s9 = smov 0   ;;  %s596_s10 = smov 0  }
   0x6   :  { %s598_s11 = smov 0   ;;  %s600_s12 = smov 0  }
   0x7 LB: > { %s615_s13 = sadd.s32 4294967295, %s561_s12   ;;  %s397_s14 = sadd.s32 4294967294, %s561_s12   ;;  %s561_s12 = sphi %s600_s12, %s779_s12   ;;  %s557_s11 = sphi %s598_s11, %s778_s11   ;;  %s553_s10 = sphi %s596_s10, %s777_s10   ;;  %s549_s9 = sphi %s594_s9, %s776_s9  }
   0x8   : > { %s619_s15 = sadd.s32 1, %s561_s12   ;;  %s28_s16 = sadd.s32 1, %s557_s11 }
   0x9   : > { %s25_s17 = ssub.s32 %s561_s12, %s619_s15  ;;  %p35_p0 = scmp.ne.s32.totalorder %s557_s11, %s553_s10 }
   0xa   : > { %p26_p1 = scmp.eq.s32.totalorder %s25_s17, 0  ;;  %p36_p2 = scmp.eq.s32.totalorder %s561_s12, 0 }
   0xb   : > { %p41_p3 = scmp.ne.s32.totalorder %s553_s10, %s549_s9  ;;  %p42_p4 = scmp.eq.s32.totalorder %s615_s13, 0 }
   0xc   : > { %s631_s18 = scalar_select %p26_p1, %s557_s11, %s28_s16  }
   0xd   : > { %p633_p5 = por %p36_p2, %p35_p0  ;;  %p637_p6 = por %p42_p4, %p41_p3 }
   0xe   : > { %p91_p7 = scmp.eq.s32.totalorder %s615_s13, 1  ;;  %p97_p8 = scmp.eq.s32.totalorder %s397_s14, 1 }
   0xf   : > { %p767_p11 = scmp.ge.s32.totalorder %s561_s12, 2 }
  0x10   : > { %p642_p9 = por %p91_p7, %p35_p0  ;;  %p646_p10 = por %p97_p8, %p41_p3 }
  0x11   : > { %113 = sbr.rel (%p767_p11) target bundleno = 62 (0x3e), region = 16 }
  0x12   : > { %s771_s21 = scalar_select %p642_p9, 1, 0 }
  0x13   : > { %s772_s22 = scalar_select %p646_p10, 1, 0 }
  0x18   : > { %s654_s23 = sand.u32 1, %s557_s11   ;;  %s417_s24 = sshll.u32 %s561_s12, 9 }
  0x19   : > { %s400_s25 = sshll.u32 %s654_s23, 6  ;;  %s127_s28 = scalar_lea.hbm %s764_s0, %s417_s24 }
  0x1a   : > { %s420_s29 = scalar_select %p633_p5, [#allocation0], [#allocation12] }
  0x1b   : > { %s121_s30 = scalar_lea.vmem [#allocation2], %s400_s25  ;;  %s563_s5 = smov 1024  }
  0x1c   : > { %s140_s3 = sshll.u32 %s121_s30, 4  ;;  %s132_s4 = sld [smem:[%s420_s29]]   ;;  %s141_s3 = int_to_ptr.vmem [resolvable:$true] %s140_s3 }
  0x1d   : > { %421 = sst [smem:[#allocation9]] (%p633_p5), %s563_s5  ;;  %s564_s6 = smov 512  }
  0x1e   : > { %422 = sst [smem:[#allocation9 + $0x1]] (%p633_p5), %s564_s6  ;;  %s565_s7 = smov 4  }
  0x1f   : > { %423 = sst [smem:[#allocation9 + $0x2]] (%p633_p5), %s565_s7  ;;  %s566_s8 = smov 128  }
  0x20   : > { %424 = sst [smem:[#allocation9 + $0x3]] (%p633_p5), %s566_s8  ;;  %s567_s16 = smov 8  }
  0x21   : > { %425 = sst [smem:[#allocation9 + $0x4]] (%p633_p5), %s566_s8  ;;  %s118_s25 = scalar_lea.sflag [#allocation3], %s654_s23 }
  0x22   : > { %s403_s14 = sshll.u32 %s132_s4, 26  ;;  %426 = sst [smem:[#allocation9 + $0x5]] (%p633_p5), %s567_s16 }
  0x23   : > { %s404_s17 = sadd.s32 134217728, %s403_s14  ;;  %s568_s26 = smov [#allocation8]  }
  0x24   : > { %427 = dma.general (%p633_p5), %s127_s28, 1024, %s141_s3, %s118_s25, %s568_s26, [#allocation9], %s404_s17, 0  }
  0x25   : > { %s405_s27 = sshll.u32 %s654_s23, 5  ;;  %s682_s5 = scalar_lea.hbm %s765_s1, %s417_s24 }
  0x26   : > { %s167_s4 = scalar_lea.vmem [#allocation5], %s405_s27  ;;  %s164_s7 = scalar_lea.sflag [#allocation6], %s654_s23 }
  0x27   : > { %s174_s6 = sshll.u32 %s167_s4, 4  ;;  %s491_s8 = scalar_lea.hbm %s682_s5, 512  ;;  %s684_s6 = int_to_ptr.vmem [resolvable:$true] %s174_s6 }
  0x28   : > { %p492_p12 = scmp.ne.s32.totalorder %s682_s5, %s491_s8  ;;  %s495_s14 = scalar_lea.hbm %s765_s1, 1024 }
  0x29   : > { %p496_p1 = scmp.lt.u32.totalorder %s682_s5, %s765_s1  ;;  %p497_p2 = scmp.lt.u32.totalorder %s495_s14, %s491_s8 }
  0x2a   : > { %p493_p13 = pnand %p492_p12, %p633_p5  ;;  %p499_p4 = scmp.lt.u32.totalorder %s491_s8, %s682_s5 }
  0x2b   : > { %p498_p3 = por %p497_p2, %p496_p1 }
  0x2c   : > { %p494_p0 = pneg %p493_p13 }
  0x2d   : > { %p500_p7 = por %p499_p4, %p498_p3 }
  0x2f   : > { %p501_p8 = pnand %p500_p7, %p494_p0 }
  0x31   : > { %504 = shalt.err (!%p501_p8)
}
  0x32   : > { %s505_s17 = scalar_lea.vmem %s684_s6, 512  ;;  %s569_s25 = smov [#allocation5]  }
  0x33   : > { %p506_p12 = scmp.ne.s32.totalorder %s684_s6, %s505_s17  ;;  %s509_s26 = sshll.u32 %s569_s25, 4  ;;  %s510_s26 = int_to_ptr.vmem [resolvable:$false] %s509_s26 }
  0x34   : > { %s511_s27 = scalar_lea.vmem %s510_s26, 1024  ;;  %p512_p10 = scmp.lt.s32.totalorder %s684_s6, %s510_s26 }
  0x35   : > { %p507_p13 = pnand %p506_p12, %p633_p5  ;;  %p513_p9 = scmp.lt.s32.totalorder %s511_s27, %s505_s17 }
  0x37   : > { %p508_p11 = pneg %p507_p13  ;;  %p514_p1 = por %p513_p9, %p512_p10 }
  0x39   : > { %p515_p2 = pnand %p514_p1, %p508_p11 }
  0x3b   : > { %518 = shalt.err (!%p515_p2)
}
  0x3c   : > { %s570_s29 = smov 128   ;;  %s571_s30 = smov 8  }
  0x3d   : > { %428 = dma.hbm_to_vmem [thread:$0]  (%p633_p5), %s682_s5, 512, %s684_s6, %s164_s7, %s570_s29, %s570_s29, %s571_s30  }
  0x3e PF: > { %p408_p0 = scmp.ge.s32.totalorder %s561_s12, 1  ;;  %p182_p3 = scmp.lt.s32.totalorder %s561_s12, 3 }
  0x40   : > { %p183_p4 = pnand %p408_p0, %p182_p3 }
  0x41   : > { %s713_s4 = sand.u32 (!%p183_p4), 1, %s553_s10  }
  0x42   : > { %186 = sbr.rel (%p183_p4) target bundleno = 96 (0x60), region = 28  ;;  %s409_s8 = sshll.u32 (!%p183_p4), %s713_s4, 6 }
  0x43   : > { %s189_s28 = scalar_lea.sflag (!%p183_p4), [#allocation3], %s713_s4  ;;  %s192_s3 = scalar_lea.vmem (!%p183_p4), [#allocation2], %s409_s8 }
  0x49   : > { %536 = dma.done.wait (%p637_p6), %s189_s28, 1024  }
  0x4a   : > { %538 = vsyncadd (%p637_p6), %s189_s28, 4294966272  ;;  %s410_s19 = sshll.u32 %s713_s4, 5  ;;  %s198_s23 = scalar_lea.sflag [#allocation6], %s713_s4 }
  0x4b   : > { %s201_s5 = scalar_lea.vmem [#allocation5], %s410_s19 }
  0x4c   : > { %540 = dma.done.wait (%p637_p6), %s198_s23, 512  }
  0x4d   : > { %542 = vsyncadd (%p637_p6), %s198_s23, 4294966784  ;;  %v230_v0 = vld [vmem:[%s192_s3] sm:$0xff]  ;;  %v231_v2 = vld [vmem:[%s192_s3 + $0x8] sm:$0xff]  ;;  %s226_s6 = scalar_lea.vmem [#allocation7], %s409_s8  ;;  %s259_s20 = scalar_lea.sflag [#allocation4], %s713_s4 }
  0x4e   : > { %v238_v1 = vld [vmem:[%s201_s5] sm:$0xff]  ;;  %v239_v4 = vld [vmem:[%s201_s5 + $0x8] sm:$0xff]  ;;  %v232_v5 = vld [vmem:[%s192_s3 + $0x10] sm:$0xff] }
  0x4f   : > { %v242_v3 = vadd.f32 %v238_v1, %v230_v0  ;;  %v240_v6 = vld [vmem:[%s201_s5 + $0x10] sm:$0xff]  ;;  %v243_v7 = vadd.f32 %v239_v4, %v231_v2  ;;  %v233_v9 = vld [vmem:[%s192_s3 + $0x18] sm:$0xff]  ;;  %v234_v11 = vld [vmem:[%s192_s3 + $0x20] sm:$0xff] }
  0x50   : > { %v244_v8 = vadd.f32 %v240_v6, %v232_v5  ;;  %v241_v10 = vld [vmem:[%s201_s5 + $0x18] sm:$0xff]  ;;  %v246_v13 = vadd.f32 %v238_v1, %v234_v11  ;;  %v235_v14 = vld [vmem:[%s192_s3 + $0x28] sm:$0xff]  ;;  %v236_v15 = vld [vmem:[%s192_s3 + $0x30] sm:$0xff] }
  0x51   : > { %250 = vst [vmem:[%s226_s6] sm:$0xff] %v242_v3  ;;  %v245_v12 = vadd.f32 %v241_v10, %v233_v9  ;;  %v237_v16 = vld [vmem:[%s192_s3 + $0x38] sm:$0xff]  ;;  %251 = vst [vmem:[%s226_s6 + $0x8] sm:$0xff] %v243_v7  ;;  %v247_v17 = vadd.f32 %v239_v4, %v235_v14  ;;  %v248_v18 = vadd.f32 %v240_v6, %v236_v15 }
  0x52   : > { %252 = vst [vmem:[%s226_s6 + $0x10] sm:$0xff] %v244_v8  ;;  %v249_v19 = vadd.f32 %v241_v10, %v237_v16  ;;  %254 = vst [vmem:[%s226_s6 + $0x20] sm:$0xff] %v246_v13 }
  0x53   : > { %253 = vst [vmem:[%s226_s6 + $0x18] sm:$0xff] %v245_v12  ;;  %255 = vst [vmem:[%s226_s6 + $0x28] sm:$0xff] %v247_v17 }
  0x54   : > { %256 = vst [vmem:[%s226_s6 + $0x30] sm:$0xff] %v248_v18  ;;  %257 = vst [vmem:[%s226_s6 + $0x38] sm:$0xff] %v249_v19 }
  0x55   : > { %s419_s7 = sshll.u32 %s615_s13, 9  ;;  %s288_s14 = sshll.u32 %s226_s6, 4  ;;  %s289_s14 = int_to_ptr.vmem [resolvable:$true] %s288_s14 }
  0x56   : > { %s271_s17 = scalar_lea.hbm %s766_s2, %s419_s7  ;;  %s572_s25 = smov 512  }
  0x57   : > { %p773_p5 = scmp.ne.s32.totalorder %s771_s21, 0  ;;  %s573_s26 = smov 1024  }
  0x58   : > { %s574_s27 = smov 4   ;;  %s575_s29 = smov 128  }
  0x59   : > { %431 = sst [smem:[#allocation11]] (%p773_p5), %s572_s25  ;;  %s576_s13 = smov 8  }
  0x5a   : > { %432 = sst [smem:[#allocation11 + $0x1]] (%p773_p5), %s573_s26  ;;  %s577_s30 = smov [#allocation10]  }
  0x5b   : > { %433 = sst [smem:[#allocation11 + $0x2]] (%p773_p5), %s574_s27  ;;  %s578_s4 = smov 0  }
  0x5c   : > { %434 = sst [smem:[#allocation11 + $0x3]] (%p773_p5), %s575_s29 }
  0x5d   : > { %435 = sst [smem:[#allocation11 + $0x4]] (%p773_p5), %s575_s29 }
  0x5e   : > { %436 = sst [smem:[#allocation11 + $0x5]] (%p773_p5), %s576_s13 }
  0x5f   : > { %437 = dma.general (%p773_p5), %s289_s14, 1024, %s271_s17, %s259_s20, %s577_s30, [#allocation11], %s578_s4, 0  }
  0x60 PF: > { %s316_s8 = sand.u32 1, %s549_s9   ;;  %p774_p6 = scmp.ne.s32.totalorder %s772_s22, 0 }
  0x61   : > { %p775_p9 = scmp.ge.s32.totalorder %s561_s12, 2  ;;  %s317_s28 = scalar_lea.sflag [#allocation4], %s316_s8 }
  0x63   : > { %p440_p10 = pnand %p775_p9, %p774_p6 }
  0x65   : > { %544 = dma.done.wait (!%p440_p10), %s317_s28, 1024  }
  0x66   : > { %546 = vsyncadd (!%p440_p10), %s317_s28, 4294966272  ;;  %p18_p11 = scmp.ge.s32.totalorder %s619_s15, 4   ;;  %s776_s9 = smov %s553_s10 }
  0x67   : > { %s777_s10 = smov %s557_s11  ;;  %s778_s11 = smov %s631_s18 }
  0x68   : > { %s779_s12 = smov %s619_s15  ;;  %20 = sbr.rel (!%p18_p11) target bundleno = 7 (0x7), region = 96 }
  0x6f   :  { %322 = vsyncpa [#allocation3], 1 }
  0x70   :  { %324 = vsyncpa [#allocation3 + $0x1], 1 }
  0x71   :  { %325 = vsyncpa [#allocation6], 1 }
  0x72   :  { %327 = vsyncpa [#allocation6 + $0x1], 1 }
  0x73   :  { %328 = vsyncpa [#allocation4], 1 }
  0x74   :  { %330 = vsyncpa [#allocation4 + $0x1], 1 }

</bundles_post_ra>
